<compile_context>
chip_gen: v7x
topology: tpu7x:2x2x1
jax: 0.10.0
libtpu: 0.0.40
codegen_flags: <defaults>
</compile_context>

<pallas_src>
import functools
import math

import jax
import jax.numpy as jnp
from jax.experimental import pallas as pl
from jax.experimental.pallas import tpu as pltpu


def _round_up(x, m):
    return (x + m - 1) // m * m


_STAGE_CFG = ((64, 3, 1), (128, 4, 2), (256, 23, 2), (512, 3, 2))   # ResNet-101


# --------------------------------------------------------------------------
# Fused matmul kernel:  out = act( (X @ W) * scale + shift [+ residual] )
# X / W enter the MXU in bf16; accumulator and epilogue stay in f32.
# --------------------------------------------------------------------------
def _mm_kernel(*refs, activation, has_res):
    if has_res:
        x_ref, w_ref, s_ref, b_ref, r_ref, o_ref, acc_ref = refs
    else:
        x_ref, w_ref, s_ref, b_ref, o_ref, acc_ref = refs
        r_ref = None
    k = pl.program_id(2)

    @pl.when(k == 0)
    def _():
        acc_ref[...] = jnp.zeros_like(acc_ref)

    acc_ref[...] += jnp.dot(x_ref[...], w_ref[...],
                            preferred_element_type=jnp.float32)

    @pl.when(k == pl.num_programs(2) - 1)
    def _():
        y = acc_ref[...] * s_ref[...] + b_ref[...]
        if r_ref is not None:
            y = y + r_ref[...].astype(jnp.float32)
        if activation == "relu":
            y = jnp.maximum(y, 0.0)
        elif activation == "gelu":  # BERT tanh-approx GELU
            c = math.sqrt(2.0 / math.pi)
            y = 0.5 * y * (1.0 + jnp.tanh(c * (y + 0.044715 * y * y * y)))
        o_ref[...] = y.astype(o_ref.dtype)


@functools.lru_cache(maxsize=None)
def _build_matmul(Mp, Kp, Np, tm, tk, tn, activation, has_res, out_dtype):
    kernel = functools.partial(_mm_kernel, activation=activation, has_res=has_res)
    in_specs = [
        pl.BlockSpec((tm, tk), lambda i, j, k: (i, k)),
        pl.BlockSpec((tk, tn), lambda i, j, k: (k, j)),
        pl.BlockSpec((1, tn), lambda i, j, k: (0, j)),
        pl.BlockSpec((1, tn), lambda i, j, k: (0, j)),
    ]
    if has_res:
        in_specs.append(pl.BlockSpec((tm, tn), lambda i, j, k: (i, j)))
    call = pl.pallas_call(
        kernel,
        out_shape=jax.ShapeDtypeStruct((Mp, Np), out_dtype),
        grid_spec=pltpu.PrefetchScalarGridSpec(
            num_scalar_prefetch=0,
            grid=(Mp // tm, Np // tn, Kp // tk),
            in_specs=in_specs,
            out_specs=pl.BlockSpec((tm, tn), lambda i, j, k: (i, j)),
            scratch_shapes=[pltpu.VMEM((tm, tn), jnp.float32)],
        ),
        compiler_params=pltpu.CompilerParams(
            dimension_semantics=("parallel", "parallel", "arbitrary")),
    )
    return jax.jit(call)


def matmul_fused(x, w, scale=None, shift=None, residual=None, activation=None,
                 out_dtype=jnp.float32):
    M, K = x.shape
    _, N = w.shape
    x = x.astype(jnp.bfloat16)            # MXU-native input dtype
    w = w.astype(jnp.bfloat16)            # (no-op if weights are stored bf16)
    scale = (jnp.ones((N,), jnp.float32) if scale is None
             else scale.astype(jnp.float32))
    shift = (jnp.zeros((N,), jnp.float32) if shift is None
             else shift.astype(jnp.float32))

    # --- M tiling ---
    if M <= 512:
        Mp = _round_up(M, 16)
        tm = Mp
    else:
        Mp = _round_up(M, 256)
        tm = 256
    # --- K tiling: 128-aligned, single k-step whenever K <= 2048 ---
    Kp = _round_up(K, 128)
    if Kp <= 2048:
        tk = Kp
    else:
        q = Kp // 128
        tk = 128 * max(d for d in range(1, 17) if q % d == 0)
    # --- N tiling: wider tiles for the tiny-M (BERT) matmuls ---
    Np = _round_up(N, 128)
    if M <= 64:
        tn = 512 if Np % 512 == 0 else (256 if Np % 256 == 0 else 128)
    else:
        tn = 256 if Np % 256 == 0 else 128

    xp = jnp.pad(x, ((0, Mp - M), (0, Kp - K)))
    wp = jnp.pad(w, ((0, Kp - K), (0, Np - N)))
    sp = jnp.pad(scale, (0, Np - N)).reshape(1, Np)
    bp = jnp.pad(shift, (0, Np - N)).reshape(1, Np)
    args = [xp, wp, sp, bp]
    if residual is not None:
        args.append(jnp.pad(residual, ((0, Mp - M), (0, Np - N))))
    fn = _build_matmul(Mp, Kp, Np, tm, tk, tn, activation,
                       residual is not None, out_dtype)
    return fn(*args)[:M, :N]


# --------------------------------------------------------------------------
# Pool kernel: reduce stacked patches (P, M, C) -> (M, C) by max or mean
# --------------------------------------------------------------------------
def _pool_kernel(x_ref, o_ref, *, op, inv_count):
    x = x_ref[...].astype(jnp.float32)
    if op == "max":
        o_ref[...] = jnp.max(x, axis=0).astype(o_ref.dtype)
    else:
        o_ref[...] = (jnp.sum(x, axis=0) * inv_count).astype(o_ref.dtype)


@functools.lru_cache(maxsize=None)
def _build_pool(P, Mp, C, tm, op, count, out_dtype):
    kernel = functools.partial(_pool_kernel, op=op, inv_count=1.0 / count)
    call = pl.pallas_call(
        kernel,
        out_shape=jax.ShapeDtypeStruct((Mp, C), out_dtype),
        grid_spec=pltpu.PrefetchScalarGridSpec(
            num_scalar_prefetch=0,
            grid=(Mp // tm,),
            in_specs=[pl.BlockSpec((P, tm, C), lambda i: (0, i, 0))],
            out_specs=pl.BlockSpec((tm, C), lambda i: (i, 0)),
        ),
        compiler_params=pltpu.CompilerParams(dimension_semantics=("parallel",)),
    )
    return jax.jit(call)


def pool_reduce(stacked, op, out_dtype=None):
    P, M, C = stacked.shape
    if out_dtype is None:
        out_dtype = stacked.dtype
    if M <= 256:
        Mp, tm = M, M
    else:
        Mp = _round_up(M, 256)
        tm = 256
    sp = jnp.pad(stacked, ((0, 0), (0, Mp - M), (0, 0)))
    return _build_pool(P, Mp, C, tm, op, P, out_dtype)(sp)[:M]


# --------------------------------------------------------------------------
# LayerNorm kernel (BERT-pytorch style: unbiased std, a_2*(x-mu)/(std+eps)+b_2)
# --------------------------------------------------------------------------
def _ln_kernel(x_ref, g_ref, b_ref, o_ref, *, eps, n):
    x = x_ref[...]
    mean = jnp.mean(x, axis=-1, keepdims=True)
    xc = x - mean
    var = jnp.sum(xc * xc, axis=-1, keepdims=True) / (n - 1)  # unbiased, matches torch.std
    o_ref[...] = (g_ref[...] * xc / (jnp.sqrt(var) + eps) + b_ref[...]).astype(o_ref.dtype)


@functools.lru_cache(maxsize=None)
def _build_layernorm(R, D, eps):
    kernel = functools.partial(_ln_kernel, eps=eps, n=D)
    return jax.jit(pl.pallas_call(kernel, out_shape=jax.ShapeDtypeStruct((R, D), jnp.float32)))


def layernorm(x, g, b, eps=1e-6):
    R, D = x.shape
    return _build_layernorm(R, D, eps)(x, g.reshape(1, D), b.reshape(1, D))


# --------------------------------------------------------------------------
# Multi-head attention kernel (scores/softmax/context per (batch*head) block)
# --------------------------------------------------------------------------
def _attn_kernel(q_ref, k_ref, v_ref, o_ref, *, scale):
    q = q_ref[0]
    k = k_ref[0]
    v = v_ref[0]
    s = jax.lax.dot_general(q, k, (((1,), (1,)), ((), ())),
                            preferred_element_type=jnp.float32) * scale
    s = s - jnp.max(s, axis=-1, keepdims=True)
    e = jnp.exp(s)
    p = e / jnp.sum(e, axis=-1, keepdims=True)
    o_ref[0] = jnp.dot(p, v, preferred_element_type=jnp.float32).astype(o_ref.dtype)


@functools.lru_cache(maxsize=None)
def _build_attention(BH, S, DK):
    kernel = functools.partial(_attn_kernel, scale=1.0 / math.sqrt(DK))
    call = pl.pallas_call(
        kernel,
        out_shape=jax.ShapeDtypeStruct((BH, S, DK), jnp.float32),
        grid_spec=pltpu.PrefetchScalarGridSpec(
            num_scalar_prefetch=0,
            grid=(BH,),
            in_specs=[pl.BlockSpec((1, S, DK), lambda i: (i, 0, 0))] * 3,
            out_specs=pl.BlockSpec((1, S, DK), lambda i: (i, 0, 0)),
        ),
        compiler_params=pltpu.CompilerParams(dimension_semantics=("parallel",)),
    )
    return jax.jit(call)


# --------------------------------------------------------------------------
# Conv / pooling wrappers (im2col glue in JAX, matmul in Pallas).  Each wrapper
# is jit'ed so the pad/stack/reshape/slice glue fuses with the pallas_call;
# jit's cache keys on shapes, so the 100+ conv call sites reuse ~25 programs.
# --------------------------------------------------------------------------
@functools.partial(jax.jit, static_argnames=("stride", "padding", "activation"))
def _conv2d_bn_impl(x, w, scale, shift, residual, stride, padding, activation):
    # x: NHWC bf16, w: (kh, kw, cin, cout) bf16; BN folded into (scale, shift)
    N, H, W, C = x.shape
    kh, kw, _, Cout = w.shape
    if kh == 1 and kw == 1 and padding == 0:
        xs = x[:, ::stride, ::stride, :]
        Ho, Wo = xs.shape[1], xs.shape[2]
        patches = xs.reshape(N * Ho * Wo, C)
    else:
        Ho = (H + 2 * padding - kh) // stride + 1
        Wo = (W + 2 * padding - kw) // stride + 1
        xp = jnp.pad(x, ((0, 0), (padding, padding), (padding, padding), (0, 0)))
        cols = [xp[:, i:i + stride * Ho:stride, j:j + stride * Wo:stride, :]
                for i in range(kh) for j in range(kw)]
        patches = jnp.stack(cols, axis=3).reshape(N * Ho * Wo, kh * kw * C)
    wm = w.reshape(kh * kw * C, Cout)
    res2d = None if residual is None else residual.reshape(N * Ho * Wo, Cout)
    y = matmul_fused(patches, wm, scale, shift, residual=res2d,
                     activation=activation, out_dtype=jnp.bfloat16)
    return y.reshape(N, Ho, Wo, Cout)


def conv2d_bn(x, w, scale, shift, stride=1, padding=0, activation=None, residual=None):
    return _conv2d_bn_impl(x, w, scale, shift, residual,
                           stride=stride, padding=padding, activation=activation)


@jax.jit
def maxpool_3x3_s2_p1(x):
    N, H, W, C = x.shape
    Ho = (H + 2 - 3) // 2 + 1
    Wo = (W + 2 - 3) // 2 + 1
    # Zero border padding is exactly equivalent to PyTorch's -inf padding here:
    # the input is post-ReLU (>= 0) and every window contains a valid element.
    xp = jnp.pad(x, ((0, 0), (1, 1), (1, 1), (0, 0)))
    cols = [xp[:, i:i + 2 * Ho:2, j:j + 2 * Wo:2, :] for i in range(3) for j in range(3)]
    stacked = jnp.stack(cols, axis=0).reshape(9, -1)
    total = N * Ho * Wo * C
    if total % 128 == 0:          # lane-dense 128-wide reduction rows
        stacked = stacked.reshape(9, total // 128, 128)
    else:
        stacked = stacked.reshape(9, N * Ho * Wo, C)
    return pool_reduce(stacked, "max").reshape(N, Ho, Wo, C)


@jax.jit
def avgpool_7(x):
    # x: (N, 7, 7, C) -> (N, C), mean over the 49 spatial positions (AvgPool2d(7))
    N, H, W, C = x.shape
    stacked = x.reshape(N, H * W, C).transpose(1, 0, 2)
    return pool_reduce(stacked, "mean", out_dtype=jnp.float32)


@functools.lru_cache(maxsize=None)
def bn_fold(c, eps=1e-5):
    gamma = jnp.ones((c,), jnp.float32)
    beta = jnp.zeros((c,), jnp.float32)
    mean = jnp.zeros((c,), jnp.float32)
    var = jnp.ones((c,), jnp.float32)
    scale = gamma / jnp.sqrt(var + eps)
    shift = beta - mean * scale
    return scale, shift


# --------------------------------------------------------------------------
# Deterministic parameter construction (ResNet-101 backbone + 1-layer BERT)
# --------------------------------------------------------------------------
def conv_init(key, kh, kw, cin, cout):
    std = math.sqrt(2.0 / (kh * kw * cin))
    w = jax.random.normal(key, (kh, kw, cin, cout), jnp.float32) * std
    return w.astype(jnp.bfloat16)      # MXU-native weight storage


def make_params(key, num_classes, length):
    cnt = [0]

    def nk():
        cnt[0] += 1
        return jax.random.fold_in(key, cnt[0])

    params = {"conv1": conv_init(nk(), 7, 7, 3, 64)}
    stages = []
    inplanes = 64
    for planes, nblocks, stride in _STAGE_CFG:
        blocks = []
        for b in range(nblocks):
            s = stride if b == 0 else 1
            blk = {
                "w1": conv_init(nk(), 1, 1, inplanes, planes),
                "w2": conv_init(nk(), 3, 3, planes, planes),
                "w3": conv_init(nk(), 1, 1, planes, planes * 4),
            }
            if s != 1 or inplanes != planes * 4:
                blk["wd"] = conv_init(nk(), 1, 1, inplanes, planes * 4)
            inplanes = planes * 4
            blocks.append(blk)
        stages.append(blocks)
    params["stages"] = stages

    D, FF, std = 2048, 4 * 2048, 0.02
    wq = jax.random.normal(nk(), (D, D), jnp.float32) * std
    wk = jax.random.normal(nk(), (D, D), jnp.float32) * std
    wv = jax.random.normal(nk(), (D, D), jnp.float32) * std
    bert = {
        "cls": jax.random.normal(nk(), (1, 1, D), jnp.float32),
        "pos": jax.random.normal(nk(), (1, length + 1, D), jnp.float32) * std,
        "ln1_g": jnp.ones((D,), jnp.float32), "ln1_b": jnp.zeros((D,), jnp.float32),
        "ln2_g": jnp.ones((D,), jnp.float32), "ln2_b": jnp.zeros((D,), jnp.float32),
        # fused Q|K|V projection: one (2048, 6144) matmul instead of three
        "wqkv": jnp.concatenate([wq, wk, wv], axis=1).astype(jnp.bfloat16),
        "bqkv": jnp.zeros((3 * D,), jnp.float32),
        "wo": (jax.random.normal(nk(), (D, D), jnp.float32) * std).astype(jnp.bfloat16),
        "bo": jnp.zeros((D,), jnp.float32),
        "w1": (jax.random.normal(nk(), (D, FF), jnp.float32) * std).astype(jnp.bfloat16),
        "b1": jnp.zeros((FF,), jnp.float32),
        "w2": (jax.random.normal(nk(), (FF, D), jnp.float32) * std).astype(jnp.bfloat16),
        "b2": jnp.zeros((D,), jnp.float32),
    }
    params["bert"] = bert

    limit = math.sqrt(6.0 / (D + num_classes))   # xavier_uniform, zero bias
    params["fc_w"] = jax.random.uniform(nk(), (D, num_classes), jnp.float32, -limit, limit)
    params["fc_b"] = jnp.zeros((num_classes,), jnp.float32)
    return params


# --------------------------------------------------------------------------
# Forward pass
# --------------------------------------------------------------------------
def bottleneck(x, blk, stride):
    planes = blk["w1"].shape[-1]
    out = conv2d_bn(x, blk["w1"], *bn_fold(planes), stride=1, padding=0, activation="relu")
    out = conv2d_bn(out, blk["w2"], *bn_fold(planes), stride=stride, padding=1,
                    activation="relu")
    if "wd" in blk:
        res = conv2d_bn(x, blk["wd"], *bn_fold(planes * 4), stride=stride, padding=0,
                        activation=None)
    else:
        res = x
    # conv3 + bn3 + residual add + relu, all fused in the matmul epilogue
    return conv2d_bn(out, blk["w3"], *bn_fold(planes * 4), stride=1, padding=0,
                     activation="relu", residual=res)


@jax.jit
def bert_forward(x, p):
    # x: (B, L, 2048) f32.  Eval-mode BERT5: all-ones mask, dropout disabled.
    B, L, D = x.shape
    S, H = L + 1, 8
    DK = D // H
    cls = jnp.broadcast_to(p["cls"], (B, 1, D))
    h = jnp.concatenate([cls, x], axis=1) + p["pos"]   # CLS token + learned positions
    h2d = h.reshape(B * S, D)

    # multi-head self-attention sublayer (pre-norm residual)
    n1 = layernorm(h2d, p["ln1_g"], p["ln1_b"])
    qkv = matmul_fused(n1, p["wqkv"], shift=p["bqkv"])   # fused Q|K|V projection
    q, k, v = qkv[:, :D], qkv[:, D:2 * D], qkv[:, 2 * D:]

    def split_heads(t):
        return t.reshape(B, S, H, DK).transpose(0, 2, 1, 3).reshape(B * H, S, DK)

    ctx = _build_attention(B * H, S, DK)(split_heads(q), split_heads(k), split_heads(v))
    ctx = ctx.reshape(B, H, S, DK).transpose(0, 2, 1, 3).reshape(B * S, D)
    h2d = h2d + matmul_fused(ctx, p["wo"], shift=p["bo"])

    # position-wise feed-forward sublayer (pre-norm residual, GELU)
    n2 = layernorm(h2d, p["ln2_g"], p["ln2_b"])
    f = matmul_fused(n2, p["w1"], shift=p["b1"], activation="gelu")
    f = matmul_fused(f, p["w2"], shift=p["b2"])
    h2d = h2d + f

    return h2d.reshape(B, S, D), None   # maskSample is None in eval mode


def pose_resnet101_bert10_forward(x_nchw, params, length):
    # features1 + features2 == ResNet-101 conv1 .. layer4 (eval mode, BN folded)
    x = jnp.transpose(x_nchw, (0, 2, 3, 1)).astype(jnp.bfloat16)   # NCHW -> NHWC, bf16
    x = conv2d_bn(x, params["conv1"], *bn_fold(64), stride=2, padding=3, activation="relu")
    x = maxpool_3x3_s2_p1(x)
    for (planes, nblocks, stage_stride), blocks in zip(_STAGE_CFG, params["stages"]):
        for b, blk in enumerate(blocks):
            x = bottleneck(x, blk, stage_stride if b == 0 else 1)
    feats = avgpool_7(x)                              # (frames, 2048) f32
    feats = feats.reshape(-1, length, 2048)           # (B, length, 2048)
    input_vectors = feats
    output, mask_sample = bert_forward(feats, params["bert"])
    classification_out = output[:, 0, :]
    sequence_out = output[:, 1:, :]
    # nn.Dropout(p=0.8) is identity in eval mode.
    logits = matmul_fused(classification_out, params["fc_w"], shift=params["fc_b"])
    return logits, input_vectors, sequence_out, mask_sample


if __name__ == "__main__":
    num_classes = 10
    length = 7                      # one clip of `length` frames -> BERT seq = length + 1 = 8
    key = jax.random.PRNGKey(0)
    x = jax.random.normal(jax.random.fold_in(key, 10_000),
                          (length, 3, 224, 224), jnp.float32)

    params = make_params(key, num_classes, length)
    logits, input_vectors, sequence_out, mask_sample = pose_resnet101_bert10_forward(
        x, params, length)

    jax.block_until_ready((logits, input_vectors, sequence_out))
    assert logits.shape == (1, num_classes)
    assert input_vectors.shape == (1, length, 2048)
    assert sequence_out.shape == (1, length, 2048)
    assert mask_sample is None
    print("KERNEL_OK")
</pallas_src>

<mosaic_0001>
module attributes {stable_mosaic.version = 11 : i64} {
  func.func @_mm_kernel(%arg0: i32, %arg1: i32, %arg2: i32, %arg3: memref<256x256xbf16, #tpu.memory_space<vmem>>, %arg4: memref<256x128xbf16, #tpu.memory_space<vmem>>, %arg5: memref<1x128xf32, #tpu.memory_space<vmem>>, %arg6: memref<1x128xf32, #tpu.memory_space<vmem>>, %arg7: memref<256x128xbf16, #tpu.memory_space<vmem>>, %arg8: memref<256x128xf32, #tpu.memory_space<vmem>>) attributes {dimension_semantics = [#tpu.dimension_semantics<parallel>, #tpu.dimension_semantics<parallel>, #tpu.dimension_semantics<arbitrary>], iteration_bounds = array<i64: 343, 1, 1>, scalar_prefetch = 0 : i64, scratch_operands = 1 : i64, tpu.core_type = #tpu.core_type<tc>, window_params = [{transform_indices = @transform_0, window_bounds = array<i64: 256, 256>}, {transform_indices = @transform_1, window_bounds = array<i64: 256, 128>}, {transform_indices = @transform_2, window_bounds = array<i64: 1, 128>}, {transform_indices = @transform_3, window_bounds = array<i64: 1, 128>}, {transform_indices = @transform_4, window_bounds = array<i64: 256, 128>}]} {
    %c0_i32 = arith.constant 0 : i32
    %0 = arith.cmpi eq, %arg2, %c0_i32 : i32
    %1 = arith.extui %0 : i1 to i32
    %c0_i32_0 = arith.constant 0 : i32
    %2 = arith.cmpi ne, %1, %c0_i32_0 : i32
    scf.if %2 {
      %cst_10 = arith.constant 0.000000e+00 : f32
      %12 = vector.broadcast %cst_10 : f32 to vector<256x128xf32>
      %c0_11 = arith.constant 0 : index
      %c0_12 = arith.constant 0 : index
      %13 = vector.load %arg8[%c0_11, %c0_12] : memref<256x128xf32, #tpu.memory_space<vmem>>, vector<256x128xf32>
      tpu.vector_store %arg8[%c0_11, %c0_12], %12 {strides = array<i32>} : memref<256x128xf32, #tpu.memory_space<vmem>>, vector<256x128xf32>,
    } else {
    }
    %c0 = arith.constant 0 : index
    %c0_1 = arith.constant 0 : index
    %3 = vector.load %arg8[%c0, %c0_1] : memref<256x128xf32, #tpu.memory_space<vmem>>, vector<256x128xf32>
    %c0_2 = arith.constant 0 : index
    %c0_3 = arith.constant 0 : index
    %4 = vector.load %arg3[%c0_2, %c0_3] : memref<256x256xbf16, #tpu.memory_space<vmem>>, vector<256x256xbf16>
    %c0_4 = arith.constant 0 : index
    %c0_5 = arith.constant 0 : index
    %5 = vector.load %arg4[%c0_4, %c0_5] : memref<256x128xbf16, #tpu.memory_space<vmem>>, vector<256x128xbf16>
    %cst = arith.constant dense<0.000000e+00> : vector<256x128xf32>
    %6 = tpu.matmul %4, %5, %cst {dimension_numbers = #tpu.dot_dimension_numbers<[1], [0], [0], [1], [0, 0, 1, 1], [], []>} : vector<256x256xbf16>, vector<256x128xbf16>, vector<256x128xf32> -> vector<256x128xf32>
    %7 = arith.addf %3, %6 : vector<256x128xf32>
    %c0_6 = arith.constant 0 : index
    %c0_7 = arith.constant 0 : index
    %8 = vector.load %arg8[%c0_6, %c0_7] : memref<256x128xf32, #tpu.memory_space<vmem>>, vector<256x128xf32>
    tpu.vector_store %arg8[%c0_6, %c0_7], %7 {strides = array<i32>} : memref<256x128xf32, #tpu.memory_space<vmem>>, vector<256x128xf32>,
    %c0_i32_8 = arith.constant 0 : i32
    %9 = arith.cmpi eq, %arg2, %c0_i32_8 : i32
    %10 = arith.extui %9 : i1 to i32
    %c0_i32_9 = arith.constant 0 : i32
    %11 = arith.cmpi ne, %10, %c0_i32_9 : i32
    scf.if %11 {
      %c0_10 = arith.constant 0 : index
      %c0_11 = arith.constant 0 : index
      %12 = vector.load %arg8[%c0_10, %c0_11] : memref<256x128xf32, #tpu.memory_space<vmem>>, vector<256x128xf32>
      %c0_12 = arith.constant 0 : index
      %c0_13 = arith.constant 0 : index
      %13 = vector.load %arg5[%c0_12, %c0_13] : memref<1x128xf32, #tpu.memory_space<vmem>>, vector<1x128xf32>
      %14 = vector.broadcast %13 : vector<1x128xf32> to vector<256x128xf32>
      %15 = arith.mulf %12, %14 : vector<256x128xf32>
      %c0_14 = arith.constant 0 : index
      %c0_15 = arith.constant 0 : index
      %16 = vector.load %arg6[%c0_14, %c0_15] : memref<1x128xf32, #tpu.memory_space<vmem>>, vector<1x128xf32>
      %17 = vector.broadcast %16 : vector<1x128xf32> to vector<256x128xf32>
      %18 = arith.addf %15, %17 : vector<256x128xf32>
      %cst_16 = arith.constant 0.000000e+00 : f32
      %19 = vector.broadcast %cst_16 : f32 to vector<256x128xf32>
      %20 = arith.maximumf %18, %19 : vector<256x128xf32>
      %21 = arith.truncf %20 : vector<256x128xf32> to vector<256x128xbf16>
      %c0_17 = arith.constant 0 : index
      %c0_18 = arith.constant 0 : index
      %22 = vector.load %arg7[%c0_17, %c0_18] : memref<256x128xbf16, #tpu.memory_space<vmem>>, vector<256x128xbf16>
      tpu.vector_store %arg7[%c0_17, %c0_18], %21 {strides = array<i32>} : memref<256x128xbf16, #tpu.memory_space<vmem>>, vector<256x128xbf16>,
    } else {
    }
    return
  }
  func.func @transform_0(%arg0: i32, %arg1: i32, %arg2: i32) -> (i32, i32) {
    %c0_i32 = arith.constant 0 : i32
    return %arg0, %arg2 : i32, i32
  }
  func.func @transform_1(%arg0: i32, %arg1: i32, %arg2: i32) -> (i32, i32) {
    %c0_i32 = arith.constant 0 : i32
    return %arg2, %arg1 : i32, i32
  }
  func.func @transform_2(%arg0: i32, %arg1: i32, %arg2: i32) -> (i32, i32) {
    %c0_i32 = arith.constant 0 : i32
    %c0_i32_0 = arith.constant 0 : i32
    return %c0_i32, %arg1 : i32, i32
  }
  func.func @transform_3(%arg0: i32, %arg1: i32, %arg2: i32) -> (i32, i32) {
    %c0_i32 = arith.constant 0 : i32
    %c0_i32_0 = arith.constant 0 : i32
    return %c0_i32, %arg1 : i32, i32
  }
  func.func @transform_4(%arg0: i32, %arg1: i32, %arg2: i32) -> (i32, i32) {
    %c0_i32 = arith.constant 0 : i32
    return %arg0, %arg1 : i32, i32
  }
}

</mosaic_0001>

<bundles_post_ra>
// kernel: tpu_custom_call.1
= control target key start
LH: loop header
LB: loop body
LE: loop exit
PB: predicated region body
PF: predicated region fallthrough
CT: control target
= control target key end

     0   :  { %9 = vsyncpa [#allocation4], 0  ;;  %s2539_s0 = inlined_call_operand.hbm [shape: bf16[87808,256], index: 0, kind: input, shape index: {}]   ;;  %s2540_s1 = inlined_call_operand.hbm [shape: bf16[256,128], index: 1, kind: input, shape index: {}]   ;;  %s2541_s2 = inlined_call_operand.hbm [shape: f32[1,128], index: 2, kind: input, shape index: {}]   ;;  %s2542_s3 = inlined_call_operand.hbm [shape: f32[1,128], index: 3, kind: input, shape index: {}]   ;;  %s2543_s4 = inlined_call_operand.hbm [shape: bf16[87808,128], index: 4, kind: output, shape index: {}]  }
   0x1   :  { %11 = vsyncpa [#allocation4 + $0x1], 0 }
   0x2   :  { %12 = vsyncpa [#allocation7], 0 }
   0x3   :  { %13 = vsyncpa [#allocation10], 0 }
   0x4   :  { %14 = vsyncpa [#allocation5], 0 }
   0x5   :  { %16 = vsyncpa [#allocation5 + $0x1], 0  ;;  %s2138_s15 = smov 0   ;;  %s2140_s16 = smov 0  }
   0x6   :  { %s2142_s17 = smov 0   ;;  %s2144_s18 = smov 0  }
   0x7   :  { %s2146_s19 = smov 0   ;;  %s2148_s20 = smov 0  }
   0x8 LB: > { %s1371_s21 = sadd.s32 4294967295, %s2100_s20   ;;  %s1372_s22 = sadd.s32 4294967294, %s2100_s20   ;;  %s2100_s20 = sphi %s2148_s20, %s22_s20   ;;  %s2096_s19 = sphi %s2146_s19, %s2569_s19   ;;  %s2092_s18 = sphi %s2144_s18, %s2568_s18   ;;  %s2088_s17 = sphi %s2142_s17, %s2567_s17   ;;  %s2084_s16 = sphi %s2140_s16, %s2566_s16   ;;  %s2080_s15 = sphi %s2138_s15, %s2565_s15  }
   0x9   : > { %p63_p0 = scmp.ne.s32.totalorder %s2084_s16, %s2080_s15  ;;  %p2172_p1 = scmp.eq.s32.totalorder %s1371_s21, 0 }
   0xa   : > { %p2176_p2 = scmp.eq.s32.totalorder %s1371_s21, 342  ;;  %p175_p3 = scmp.eq.s32.totalorder %s1372_s22, 342 }
   0xb   : > { %s2549_s23 = scalar_select %p2172_p1, 1, 0 }
   0xc   : > { %s2550_s24 = scalar_select %p2176_p2, 1, 0 }
   0xd   : > { %p2182_p4 = por %p2172_p1, %p63_p0  ;;  %p1373_p5 = scmp.ge.s32.totalorder %s2100_s20, 1 }
   0xe   : > { %p2187_p6 = por %p175_p3, %p63_p0  ;;  %p182_p7 = scmp.lt.s32.totalorder %s2100_s20, 344 }
   0xf   : > { %s2551_s25 = scalar_select %p2182_p4, 1, 0 }
  0x10   : > { %s2552_s26 = scalar_select %p2187_p6, 1, 0 }
  0x11   : > { %p2192_p8 = pnand %p1373_p5, %p182_p7  ;;  %s2102_s28 = smov [#allocation6]  }
  0x12   : > { %2553 = sst [smem:[#allocation16_spill]] %s2552_s26  ;;  %s198_s29 = sshll.u32 %s2102_s28, 4  ;;  %s2196_s29 = int_to_ptr.vmem [resolvable:$true] %s198_s29 }
  0x13   : > { %s2554_s27 = scalar_select %p2192_p8, 1, 0 }
  0x14   : > { %p1749_p9 = pneg %p2192_p8  ;;  %s2103_s5 = smov [#allocation8]  }
  0x15   : > { %s214_s6 = sshll.u32 %s2103_s5, 4  ;;  %s2104_s7 = smov [#allocation9]   ;;  %s2206_s6 = int_to_ptr.vmem [resolvable:$true] %s214_s6 }
  0x16   : > { %p2202_p10 = pnand %p1749_p9, %p2172_p1  ;;  %s2208_s8 = sshll.u32 %s2104_s7, 4  ;;  %s228_s8 = int_to_ptr.vmem [resolvable:$true] %s2208_s8 }
  0x17   : > { %s1896_s11 = scalar_lea.hbm %s2540_s1, 2048 }
  0x18   : > { %p1897_p11 = scmp.ne.s32.totalorder %s2540_s1, %s1896_s11  ;;  %p2218_p12 = pneg %p2202_p10 }
  0x19   : > { %p1903_p3 = scmp.lt.u32.totalorder %s1896_s11, %s2540_s1 }
  0x1a   : > { %p1899_p13 = pnand %p2218_p12, %p1897_p11 }
  0x1c   : > { %p1900_p0 = pneg %p1899_p13 }
  0x1e   : > { %p1905_p5 = pnand %p1903_p3, %p1900_p0 }
  0x20   : > { %1908 = shalt.err (!%p1905_p5)
}
  0x21   : > { %s1909_s28 = scalar_lea.vmem %s2196_s29, 2048  ;;  %p1917_p1 = scmp.lt.s32.totalorder %s2196_s29, %s2196_s29 }
  0x22   : > { %p1910_p7 = scmp.ne.s32.totalorder %s2196_s29, %s1909_s28  ;;  %p1918_p4 = scmp.lt.s32.totalorder %s1909_s28, %s1909_s28 }
  0x24   : > { %p1912_p9 = pnand %p1910_p7, %p2218_p12  ;;  %p1919_p11 = por %p1918_p4, %p1917_p1 }
  0x26   : > { %p1913_p6 = pneg %p1912_p9 }
  0x28   : > { %p1920_p13 = pnand %p1919_p11, %p1913_p6 }
  0x2a   : > { %1923 = shalt.err (!%p1920_p13)
}
  0x2b   : > { %s2105_s5 = smov 64   ;;  %s2106_s7 = smov 4  }
  0x2c   : > { %1752 = dma.hbm_to_vmem [thread:$0]  (!%p2202_p10), %s2540_s1, 2048, %s2196_s29, [#allocation7], %s2105_s5, %s2105_s5, %s2106_s7  }
  0x2d   : > { %s1924_s13 = scalar_lea.hbm %s2541_s2, 16 }
  0x2e   : > { %p1925_p1 = scmp.ne.s32.totalorder %s2541_s2, %s1924_s13  ;;  %p1931_p0 = scmp.lt.u32.totalorder %s1924_s13, %s2541_s2 }
  0x30   : > { %p1927_p4 = pnand %p1925_p1, %p2218_p12 }
  0x32   : > { %p1928_p6 = pneg %p1927_p4 }
  0x34   : > { %p1933_p3 = pnand %p1931_p0, %p1928_p6 }
  0x36   : > { %1936 = shalt.err (!%p1933_p3)
}
  0x37   : > { %s1937_s29 = scalar_lea.vmem %s2206_s6, 16  ;;  %s1944_s5 = scalar_lea.vmem %s2206_s6, 32 }
  0x38   : > { %p1938_p5 = scmp.ne.s32.totalorder %s2206_s6, %s1937_s29  ;;  %p1945_p11 = scmp.lt.s32.totalorder %s2206_s6, %s2206_s6 }
  0x39   : > { %p1946_p13 = scmp.lt.s32.totalorder %s1944_s5, %s1937_s29 }
  0x3a   : > { %p1940_p7 = pnand %p1938_p5, %p2218_p12 }
  0x3b   : > { %p1947_p1 = por %p1946_p13, %p1945_p11 }
  0x3c   : > { %p1941_p9 = pneg %p1940_p7 }
  0x3e   : > { %p1948_p4 = pnand %p1947_p1, %p1941_p9 }
  0x40   : > { %1951 = shalt.err (!%p1948_p4)
}
  0x41   : > { %1755 = dma.hbm_to_vmem [thread:$0]  (!%p2202_p10), %s2541_s2, 16, %s2206_s6, [#allocation7]  }
  0x42   : > { %s1952_s11 = scalar_lea.hbm %s2542_s3, 16 }
  0x43   : > { %p1953_p6 = scmp.ne.s32.totalorder %s2542_s3, %s1952_s11  ;;  %p1959_p5 = scmp.lt.u32.totalorder %s1952_s11, %s2542_s3 }
  0x45   : > { %p1955_p0 = pnand %p1953_p6, %p2218_p12 }
  0x47   : > { %p1956_p3 = pneg %p1955_p0 }
  0x49   : > { %p1961_p7 = pnand %p1959_p5, %p1956_p3 }
  0x4b   : > { %1964 = shalt.err (!%p1961_p7)
}
  0x4c   : > { %s1965_s28 = scalar_lea.vmem %s228_s8, 16  ;;  %s1972_s6 = scalar_lea.vmem %s228_s8, 32 }
  0x4d   : > { %p1966_p9 = scmp.ne.s32.totalorder %s228_s8, %s1965_s28  ;;  %p1973_p1 = scmp.lt.s32.totalorder %s228_s8, %s228_s8 }
  0x4e   : > { %p1974_p4 = scmp.lt.s32.totalorder %s1972_s6, %s1965_s28 }
  0x4f   : > { %p1968_p11 = pnand %p1966_p9, %p2218_p12 }
  0x50   : > { %p1975_p8 = por %p1974_p4, %p1973_p1 }
  0x51   : > { %p1969_p13 = pneg %p1968_p11 }
  0x53   : > { %p1976_p2 = pnand %p1975_p8, %p1969_p13 }
  0x55   : > { %1979 = shalt.err (!%p1976_p2)
}
  0x56   : > { %1758 = dma.hbm_to_vmem [thread:$0]  (!%p2202_p10), %s2542_s3, 16, %s228_s8, [#allocation10]  }
  0x57   : > { %s50_s14 = sadd.s32 1, %s2088_s17  ;;  %s41_s26 = sadd.s32 1, %s2096_s19 }
  0x58   : > { %p57_p2 = scmp.ne.s32.totalorder %s2088_s17, %s2084_s16  ;;  %p43_p8 = scmp.ge.s32.totalorder %s41_s26, 343 }
  0x59   : > { %p58_p12 = scmp.eq.s32.totalorder %s2100_s20, 0  ;;  %p2557_p6 = scmp.ne.s32.totalorder %s2550_s24, 0 }
  0x5a   : > { %p1770_p3 = scmp.lt.s32.totalorder %s2100_s20, 343  ;;  %s2571_s26 = smov (%p43_p8, %s41_s26), 0 }
  0x5b   : > { %p2289_p0 = por %p2557_p6, %p57_p2  ;;  %p59_p5 = por %p58_p12, %p57_p2 }
  0x5c   : > { %s238_s7 = sand.u32 1, %s2088_s17   ;;  %s45_s9 = ssub.s32 %s2096_s19, %s2571_s26 }
  0x5d   : > { %p48_p7 = scmp.eq.s32.totalorder %s45_s9, 0  ;;  %s1378_s8 = sshll.u32 %s238_s7, 8 }
  0x5e   : > { %s1476_s10 = sshll.u32 %s2096_s19, 12  ;;  %s242_s21 = scalar_lea.vmem [#allocation3], %s1378_s8 }
  0x5f   : > { %s2301_s11 = scalar_select %p48_p7, %s2088_s17, %s50_s14  }
  0x60   : > { %s2306_s24 = scalar_lea.hbm %s2539_s0, %s1476_s10  ;;  %s252_s22 = sshll.u32 %s242_s21, 4  ;;  %s2308_s22 = int_to_ptr.vmem [resolvable:$true] %s252_s22 }
  0x61   : > { %p2312_p10 = pnand %p1770_p3, %p59_p5  ;;  %s2316_s6 = scalar_lea.sflag [#allocation4], %s238_s7 }
  0x62   : > { %s1980_s29 = scalar_lea.hbm %s2306_s24, 4096  ;;  %s1985_s9 = scalar_lea.hbm %s2539_s0, 1404928 }
  0x63   : > { %p1981_p9 = scmp.ne.s32.totalorder %s2306_s24, %s1980_s29  ;;  %p1982_p11 = pneg %p2312_p10 }
  0x64   : > { %p1986_p4 = scmp.lt.u32.totalorder %s2306_s24, %s2539_s0  ;;  %p1987_p2 = scmp.lt.u32.totalorder %s1985_s9, %s1980_s29 }
  0x65   : > { %p1983_p13 = pnand %p1982_p11, %p1981_p9  ;;  %p1989_p12 = scmp.lt.u32.totalorder %s1980_s29, %s2306_s24 }
  0x66   : > { %p1988_p8 = por %p1987_p2, %p1986_p4 }
  0x67   : > { %p1984_p1 = pneg %p1983_p13 }
  0x68   : > { %p1990_p6 = por %p1989_p12, %p1988_p8 }
  0x6a   : > { %p1991_p3 = pnand %p1990_p6, %p1984_p1 }
  0x6c   : > { %1994 = shalt.err (!%p1991_p3)
}
  0x6d   : > { %s1995_s7 = scalar_lea.vmem %s2308_s22, 4096  ;;  %s2107_s12 = smov [#allocation3]  }
  0x6e   : > { %p1996_p5 = scmp.ne.s32.totalorder %s2308_s22, %s1995_s7  ;;  %s2000_s13 = sshll.u32 %s2107_s12, 4  ;;  %s2001_s13 = int_to_ptr.vmem [resolvable:$false] %s2000_s13 }
  0x6f   : > { %s2002_s21 = scalar_lea.vmem %s2001_s13, 8192  ;;  %p2003_p13 = scmp.lt.s32.totalorder %s2308_s22, %s2001_s13 }
  0x70   : > { %p1998_p7 = pnand %p1996_p5, %p1982_p11  ;;  %p2004_p4 = scmp.lt.s32.totalorder %s2002_s21, %s1995_s7 }
  0x72   : > { %p1999_p9 = pneg %p1998_p7  ;;  %p2005_p2 = por %p2004_p4, %p2003_p13 }
  0x74   : > { %p2006_p8 = pnand %p2005_p2, %p1999_p9 }
  0x76   : > { %2009 = shalt.err (!%p2006_p8)
}
  0x77   : > { %s2108_s29 = smov 128   ;;  %s2109_s5 = smov 8  }
  0x78   : > { %1762 = dma.hbm_to_vmem [thread:$0]  (!%p2312_p10), %s2306_s24, 4096, %s2308_s22, %s2316_s6, %s2108_s29, %s2108_s29, %s2109_s5  }
  0x79   : > { %p2560_p11 = scmp.ne.s32.totalorder %s2554_s27, 0 }
  0x7a   : > { %s2347_s14 = sand.u32 (!%p2560_p11), 1, %s2084_s16   ;;  %p2561_p1 = scmp.ne.s32.totalorder (!%p2560_p11), %s2551_s25, 0 }
  0x7b   : > { %264 = sbr.rel (%p2560_p11) target bundleno = 466 (0x1d2), region = 36  ;;  %s1383_s9 = sshll.u32 (!%p2560_p11), %s2347_s14, 8 }
  0x7c   : > { %s267_s8 = scalar_lea.sflag (!%p2560_p11), [#allocation4], %s2347_s14  ;;  %s2351_s10 = scalar_lea.vmem (!%p2560_p11), [#allocation3], %s1383_s9 }
  0x82   : > { %2063 = dma.done.wait (%p2561_p1), %s267_s8, 4096  }
  0x83   : > { %2065 = vsyncadd (%p2561_p1), %s267_s8, 4294963200  ;;  %p2562_p10 = scmp.ne.s32.totalorder %s2549_s23, 0 }
  0x85   : > { %2067 = dma.done.wait (%p2562_p10), [#allocation7], 2064  }
  0x86   : > { %2069 = vsyncadd (%p2562_p10), [#allocation7], 4294965232 }
  0x87   : > { %2071 = dma.done.wait (%p2562_p10), [#allocation10], 16  }
  0x88   : > { %2073 = vsyncadd (%p2562_p10), [#allocation10], 4294967280  ;;  %v1832_v0 = vld [vmem:[#allocation6 + $0x40] sm:$0xff]   ;;  %v1834_v2 = vld [vmem:[#allocation6 + $0x48] sm:$0xff]   ;;  %s1387_s23 = sshll.u32 %s2347_s14, 7  ;;  %s1509_s27 = sshll.u32 %s2092_s18, 11 }
  0x89   : > { %v1833_v1 = vld [vmem:[#allocation6] sm:$0xff]   ;;  %1605 = vmatprep.subr.bf16.mxu0 %v1832_v0  ;;  %1717 = vmatprep.subr.bf16.mxu1 %v1832_v0  ;;  %v1835_v3 = vld [vmem:[#allocation6 + $0x8] sm:$0xff]   ;;  %v1836_v4 = vld [vmem:[#allocation6 + $0x50] sm:$0xff]   ;;  %s2412_s25 = scalar_lea.vmem [#allocation11], %s1387_s23  ;;  %s2487_s6 = scalar_lea.hbm %s2543_s4, %s1509_s27 }
  0x8a   : > { %1606 = vmatpush3.bf16.msra.mxu0 %v1833_v1  ;;  %1725 = vmatpush3.bf16.msra.mxu1 %v1833_v1  ;;  %v1837_v5 = vld [vmem:[#allocation6 + $0x10] sm:$0xff]   ;;  %v1838_v6 = vld [vmem:[#allocation6 + $0x58] sm:$0xff]   ;;  %v1840_v8 = vld [vmem:[#allocation6 + $0x60] sm:$0xff]   ;;  %s1245_s24 = sshll.u32 %s2412_s25, 4  ;;  %s1231_s18 = scalar_lea.sflag [#allocation5], %s2347_s14  ;;  %s2489_s24 = int_to_ptr.vmem [resolvable:$true] %s1245_s24 }
  0x8b   : > { %1607 = vmatprep.subr.bf16.mxu0 %v1834_v2  ;;  %1718 = vmatprep.subr.bf16.mxu1 %v1834_v2  ;;  %v1839_v7 = vld [vmem:[#allocation6 + $0x18] sm:$0xff]   ;;  %v1841_v9 = vld [vmem:[#allocation6 + $0x20] sm:$0xff]   ;;  %v1842_v10 = vld [vmem:[#allocation6 + $0x68] sm:$0xff]   ;;  %s2010_s7 = scalar_lea.vmem %s2489_s24, 2048  ;;  %s2110_s12 = smov [#allocation11]  }
  0x8c   : > { %v1850_v11 = vld [vmem:[%s2351_s10 + $0x4] ss:$8 sps:$4 sm:$0xff]   ;;  %v1844_v14 = vld [vmem:[#allocation6 + $0x70] sm:$0xff]   ;;  %v1846_v16 = vld [vmem:[#allocation6 + $0x78] sm:$0xff]   ;;  %p2011_p12 = scmp.ne.s32.totalorder %s2489_s24, %s2010_s7  ;;  %s2014_s13 = sshll.u32 %s2110_s12, 4  ;;  %s2015_s13 = int_to_ptr.vmem [resolvable:$false] %s2014_s13 }
  0x8d   : > { %v1853_v12 = vld [vmem:[%s2351_s10 + $0x84] ss:$8 sps:$4 sm:$0xff]   ;;  %732 = vmatprep.mubr.bf16.mxu0 %v1850_v11  ;;  %v1845_v15 = vld [vmem:[#allocation6 + $0x30] sm:$0xff]   ;;  %v1847_v17 = vld [vmem:[#allocation6 + $0x38] sm:$0xff]   ;;  %s2016_s21 = scalar_lea.vmem %s2015_s13, 4096  ;;  %p2017_p5 = scmp.lt.s32.totalorder %s2489_s24, %s2015_s13 }
  0x8e   : > { %1608 = vmatpush3.bf16.msra.mxu0 %v1835_v3  ;;  %1726 = vmatpush3.bf16.msra.mxu1 %v1835_v3  ;;  %v1843_v13 = vld [vmem:[#allocation6 + $0x28] sm:$0xff]   ;;  %v1854_v20 = vld [vmem:[%s2351_s10 + $0x14] ss:$8 sps:$4 sm:$0xff]   ;;  %v1858_v22 = vld [vmem:[%s2351_s10 + $0x10] ss:$8 sps:$4 sm:$0xff]   ;;  %p2012_p6 = pnand %p2011_p12, %p2289_p0  ;;  %p2018_p7 = scmp.lt.s32.totalorder %s2016_s21, %s2010_s7 }
  0x8f   : > { %1609 = vmatprep.subr.bf16.mxu0 %v1836_v4  ;;  %1719 = vmatprep.subr.bf16.mxu1 %v1836_v4  ;;  %v1848_v18 = vld [vmem:[%s2351_s10] ss:$8 sps:$4 sm:$0xff]   ;;  %v1856_v21 = vld [vmem:[%s2351_s10 + $0x94] ss:$8 sps:$4 sm:$0xff]   ;;  %v1859_v23 = vld [vmem:[%s2351_s10 + $0x90] ss:$8 sps:$4 sm:$0xff]  }
  0x90   : > { %796 = vmatprep.mubr.bf16.mxu1 %v1853_v12  ;;  %v1851_v19 = vld [vmem:[%s2351_s10 + $0x80] ss:$8 sps:$4 sm:$0xff]   ;;  %v1860_v24 = vld [vmem:[%s2351_s10 + $0x24] ss:$8 sps:$4 sm:$0xff]   ;;  %v1866_v28 = vld [vmem:[%s2351_s10 + $0x34] ss:$8 sps:$4 sm:$0xff]   ;;  %p2013_p3 = pneg %p2012_p6  ;;  %p2019_p9 = por %p2018_p7, %p2017_p5 }
  0x91   : > { %v1862_v25 = vld [vmem:[%s2351_s10 + $0xa4] ss:$8 sps:$4 sm:$0xff]   ;;  %v1864_v26 = vld [vmem:[%s2351_s10 + $0x20] ss:$8 sps:$4 sm:$0xff]   ;;  %v1868_v29 = vld [vmem:[%s2351_s10 + $0xb4] ss:$8 sps:$4 sm:$0xff]  }
  0x92   : > { %1610 = vmatpush3.bf16.msra.mxu0 %v1837_v5  ;;  %1727 = vmatpush3.bf16.msra.mxu1 %v1837_v5  ;;  %v1865_v27 = vld [vmem:[%s2351_s10 + $0xa0] ss:$8 sps:$4 sm:$0xff]   ;;  %v1870_v30 = vld [vmem:[%s2351_s10 + $0x30] ss:$8 sps:$4 sm:$0xff]   ;;  %v1872_v32 = vld [vmem:[%s2351_s10 + $0x44] ss:$8 sps:$4 sm:$0xff]   ;;  %p2020_p13 = pnand %p2019_p9, %p2013_p3 }
  0x93   : > { %1611 = vmatprep.subr.bf16.mxu0 %v1838_v6  ;;  %1720 = vmatprep.subr.bf16.mxu1 %v1838_v6  ;;  %v1871_v31 = vld [vmem:[%s2351_s10 + $0xb0] ss:$8 sps:$4 sm:$0xff]   ;;  %v1874_v33 = vld [vmem:[%s2351_s10 + $0xc4] ss:$8 sps:$4 sm:$0xff]   ;;  %v1876_v34 = vld [vmem:[%s2351_s10 + $0x40] ss:$8 sps:$4 sm:$0xff]  }
  0x94   : > { %v1877_v35 = vld [vmem:[%s2351_s10 + $0xc0] ss:$8 sps:$4 sm:$0xff]   ;;  %v1878_v36 = vld [vmem:[%s2351_s10 + $0x54] ss:$8 sps:$4 sm:$0xff]   ;;  %v1882_v38 = vld [vmem:[%s2351_s10 + $0x50] ss:$8 sps:$4 sm:$0xff]  }
  0x95   : > { %v1880_v37 = vld [vmem:[%s2351_s10 + $0xd4] ss:$8 sps:$4 sm:$0xff]   ;;  %v1883_v39 = vld [vmem:[%s2351_s10 + $0xd0] ss:$8 sps:$4 sm:$0xff]   ;;  %v1884_v40 = vld [vmem:[%s2351_s10 + $0x64] ss:$8 sps:$4 sm:$0xff]  }
  0x96   : > { %1612 = vmatpush3.bf16.msra.mxu0 %v1839_v7  ;;  %1728 = vmatpush3.bf16.msra.mxu1 %v1839_v7  ;;  %v1886_v41 = vld [vmem:[%s2351_s10 + $0xe4] ss:$8 sps:$4 sm:$0xff]   ;;  %v1888_v42 = vld [vmem:[%s2351_s10 + $0x60] ss:$8 sps:$4 sm:$0xff]   ;;  %v1890_v44 = vld [vmem:[%s2351_s10 + $0x74] ss:$8 sps:$4 sm:$0xff]  }
  0x97   : > { %1613 = vmatprep.subr.bf16.mxu0 %v1840_v8  ;;  %1721 = vmatprep.subr.bf16.mxu1 %v1840_v8  ;;  %v1889_v43 = vld [vmem:[%s2351_s10 + $0xe0] ss:$8 sps:$4 sm:$0xff]   ;;  %v1892_v45 = vld [vmem:[%s2351_s10 + $0xf4] ss:$8 sps:$4 sm:$0xff]   ;;  %v1894_v46 = vld [vmem:[%s2351_s10 + $0x70] ss:$8 sps:$4 sm:$0xff]  }
  0x98   : > { %v1895_v47 = vld [vmem:[%s2351_s10 + $0xf0] ss:$8 sps:$4 sm:$0xff]   ;;  %v2397_v51 = vld [vmem:[#allocation8] ss:$0 sm:$0xff]  ;;  %v2399_v57 = vld [vmem:[#allocation9] ss:$0 sm:$0xff] }
  0x9a   : > { %1614 = vmatpush3.bf16.msra.mxu0 %v1841_v9  ;;  %1729 = vmatpush3.bf16.msra.mxu1 %v1841_v9 }
  0x9b   : > { %1615 = vmatprep.subr.bf16.mxu0 %v1842_v10  ;;  %1722 = vmatprep.subr.bf16.mxu1 %v1842_v10 }
  0x9e   : > { %1616 = vmatpush3.bf16.msra.mxu0 %v1843_v13  ;;  %1730 = vmatpush3.bf16.msra.mxu1 %v1843_v13 }
  0x9f   : > { %1617 = vmatprep.subr.bf16.mxu0 %v1844_v14  ;;  %1723 = vmatprep.subr.bf16.mxu1 %v1844_v14 }
  0xa2   : > { %1618 = vmatpush3.bf16.msra.mxu0 %v1845_v15  ;;  %1731 = vmatpush3.bf16.msra.mxu1 %v1845_v15 }
  0xa3   : > { %1619 = vmatprep.subr.bf16.mxu0 %v1846_v16  ;;  %1724 = vmatprep.subr.bf16.mxu1 %v1846_v16 }
  0xa6   : > { %1620 = vmatpush3.bf16.msra.mxu0 %v1847_v17  ;;  %1732 = vmatpush3.bf16.msra.mxu1 %v1847_v17 }
  0xa9   : > { %733 = vmatmul.mubr.bf16.vlgmr.msra.gmra.mrb[0].mxu0 %v1848_v18  ;;  %797 = vmatmul.mubr.bf16.vlgmr.msra.gmra.mrb[0].mxu1 %v1851_v19 }
  0xaa   : > { %740 = vmatprep.mubr.bf16.mxu0 %v1854_v20  ;;  %804 = vmatprep.mubr.bf16.mxu1 %v1856_v21 }
  0xb1   : > { %741 = vmatmul.mubr.bf16.gmra.mrb[4].mxu0 %v1858_v22  ;;  %805 = vmatmul.mubr.bf16.gmra.mrb[4].mxu1 %v1859_v23 }
  0xb2   : > { %748 = vmatprep.mubr.bf16.mxu0 %v1860_v24  ;;  %812 = vmatprep.mubr.bf16.mxu1 %v1862_v25 }
  0xb9   : > { %749 = vmatmul.mubr.bf16.gmra.mrb[8].mxu0 %v1864_v26  ;;  %813 = vmatmul.mubr.bf16.gmra.mrb[8].mxu1 %v1865_v27 }
  0xba   : > { %756 = vmatprep.mubr.bf16.mxu0 %v1866_v28  ;;  %820 = vmatprep.mubr.bf16.mxu1 %v1868_v29 }
  0xc1   : > { %757 = vmatmul.mubr.bf16.gmra.mrb[12].mxu0 %v1870_v30  ;;  %821 = vmatmul.mubr.bf16.gmra.mrb[12].mxu1 %v1871_v31 }
  0xc2   : > { %764 = vmatprep.mubr.bf16.mxu0 %v1872_v32  ;;  %828 = vmatprep.mubr.bf16.mxu1 %v1874_v33 }
  0xc9   : > { %765 = vmatmul.mubr.bf16.gmra.mrb[16].mxu0 %v1876_v34  ;;  %829 = vmatmul.mubr.bf16.gmra.mrb[16].mxu1 %v1877_v35 }
  0xca   : > { %772 = vmatprep.mubr.bf16.mxu0 %v1878_v36  ;;  %836 = vmatprep.mubr.bf16.mxu1 %v1880_v37 }
  0xd1   : > { %773 = vmatmul.mubr.bf16.gmra.mrb[20].mxu0 %v1882_v38  ;;  %837 = vmatmul.mubr.bf16.gmra.mrb[20].mxu1 %v1883_v39 }
  0xd2   : > { %780 = vmatprep.mubr.bf16.mxu0 %v1884_v40  ;;  %844 = vmatprep.mubr.bf16.mxu1 %v1886_v41 }
  0xd9   : > { %781 = vmatmul.mubr.bf16.gmra.mrb[24].mxu0 %v1888_v42  ;;  %845 = vmatmul.mubr.bf16.gmra.mrb[24].mxu1 %v1889_v43 }
  0xda   : > { %788 = vmatprep.mubr.bf16.mxu0 %v1890_v44  ;;  %852 = vmatprep.mubr.bf16.mxu1 %v1892_v45 }
  0xe1   : > { %789 = vmatmul.mubr.bf16.gmra.mrb[28].mxu0 %v1894_v46  ;;  %853 = vmatmul.mubr.bf16.gmra.mrb[28].mxu1 %v1895_v47 }
 0x17c   : > { %v1621_v48 = vpop.f32.mrb[0].mxu0  ;;  %v1669_v49 = vpop.f32.mrb[0].mxu1 }
 0x17d   : > { %v1622_v50 = vpop.f32.mrb[1].mxu0  ;;  %v1670_v52 = vpop.f32.mrb[1].mxu1 }
 0x17e   : > { %v1623_v53 = vadd.f32 %v1622_v50, %v1621_v48  ;;  %v1671_v54 = vadd.f32 %v1670_v52, %v1669_v49  ;;  %v1624_v55 = vpop.f32.mrb[2].mxu0  ;;  %v1672_v56 = vpop.f32.mrb[2].mxu1 }
 0x17f   : > { %v1625_v58 = vpop.f32.mrb[3].mxu0  ;;  %v1673_v59 = vpop.f32.mrb[3].mxu1 }
 0x180   : > { %v967_v60 = vmul.f32 %v1623_v53, %v2397_v51  ;;  %v983_v61 = vmul.f32 %v1671_v54, %v2397_v51  ;;  %v1626_v62 = vadd.f32 %v1625_v58, %v1624_v55  ;;  %v1674_v63 = vadd.f32 %v1673_v59, %v1672_v56 }
 0x182   : > { %v1006_v0 = vadd.f32 %v2399_v57, %v967_v60  ;;  %v1022_v1 = vadd.f32 %v2399_v57, %v983_v61  ;;  %v968_v2 = vmul.f32 %v1626_v62, %v2397_v51  ;;  %v984_v3 = vmul.f32 %v1674_v63, %v2397_v51 }
 0x184   : > { %v1007_v4 = vadd.f32 %v2399_v57, %v968_v2  ;;  %v1023_v5 = vadd.f32 %v2399_v57, %v984_v3  ;;  %v1627_v6 = vpop.f32.mrb[4].mxu0  ;;  %v1675_v7 = vpop.f32.mrb[4].mxu1  ;;  %v1038_v8 = vmax.f32 %v1006_v0, 0.0  ;;  %v1054_v9 = vmax.f32 %v1022_v1, 0.0 }
 0x185   : > { %v1628_v10 = vpop.f32.mrb[5].mxu0  ;;  %v1676_v11 = vpop.f32.mrb[5].mxu1 }
 0x186   : > { %v1039_v12 = vmax.f32 %v1007_v4, 0.0  ;;  %v1055_v13 = vmax.f32 %v1023_v5, 0.0  ;;  %v1629_v14 = vadd.f32 %v1628_v10, %v1627_v6  ;;  %v1677_v15 = vadd.f32 %v1676_v11, %v1675_v7  ;;  %v1630_v16 = vpop.f32.mrb[6].mxu0  ;;  %v1678_v17 = vpop.f32.mrb[6].mxu1 }
 0x187   : > { %v1631_v18 = vpop.f32.mrb[7].mxu0  ;;  %v1679_v19 = vpop.f32.mrb[7].mxu1 }
 0x188   : > { %v1513_v20 = vpack.c.bf16 %v1039_v12, %v1038_v8  ;;  %v1553_v21 = vpack.c.bf16 %v1055_v13, %v1054_v9  ;;  %v969_v22 = vmul.f32 %v1629_v14, %v2397_v51  ;;  %v985_v23 = vmul.f32 %v1677_v15, %v2397_v51 }
 0x189   : > { %v1632_v24 = vadd.f32 %v1631_v18, %v1630_v16  ;;  %v1680_v25 = vadd.f32 %v1679_v19, %v1678_v17 }
 0x18a   : > { %1514 = vst [vmem:[%s2412_s25] sm:$0xff] %v1513_v20   ;;  %1597 = vst [vmem:[%s2412_s25 + $0x40] sm:$0xff] %v1553_v21   ;;  %v1008_v26 = vadd.f32 %v2399_v57, %v969_v22  ;;  %v1024_v27 = vadd.f32 %v2399_v57, %v985_v23 }
 0x18b   : > { %v970_v28 = vmul.f32 %v1632_v24, %v2397_v51  ;;  %v986_v29 = vmul.f32 %v1680_v25, %v2397_v51 }
 0x18c   : > { %v1633_v30 = vpop.f32.mrb[8].mxu0  ;;  %v1681_v31 = vpop.f32.mrb[8].mxu1  ;;  %v1040_v40 = vmax.f32 %v1008_v26, 0.0  ;;  %v1056_v41 = vmax.f32 %v1024_v27, 0.0 }
 0x18d   : > { %v1009_v32 = vadd.f32 %v2399_v57, %v970_v28  ;;  %v1025_v33 = vadd.f32 %v2399_v57, %v986_v29  ;;  %v1634_v34 = vpop.f32.mrb[9].mxu0  ;;  %v1682_v35 = vpop.f32.mrb[9].mxu1 }
 0x18e   : > { %v1635_v36 = vadd.f32 %v1634_v34, %v1633_v30  ;;  %v1683_v37 = vadd.f32 %v1682_v35, %v1681_v31  ;;  %v1636_v38 = vpop.f32.mrb[10].mxu0  ;;  %v1684_v39 = vpop.f32.mrb[10].mxu1 }
 0x18f   : > { %v1041_v42 = vmax.f32 %v1009_v32, 0.0  ;;  %v1057_v43 = vmax.f32 %v1025_v33, 0.0  ;;  %v1637_v44 = vpop.f32.mrb[11].mxu0  ;;  %v1685_v45 = vpop.f32.mrb[11].mxu1 }
 0x190   : > { %v971_v46 = vmul.f32 %v1635_v36, %v2397_v51  ;;  %v987_v47 = vmul.f32 %v1683_v37, %v2397_v51  ;;  %v1638_v48 = vadd.f32 %v1637_v44, %v1636_v38  ;;  %v1686_v49 = vadd.f32 %v1685_v45, %v1684_v39 }
 0x191   : > { %v1518_v50 = vpack.c.bf16 %v1041_v42, %v1040_v40  ;;  %v1558_v52 = vpack.c.bf16 %v1057_v43, %v1056_v41 }
 0x192   : > { %v1010_v53 = vadd.f32 %v2399_v57, %v971_v46  ;;  %v1026_v54 = vadd.f32 %v2399_v57, %v987_v47  ;;  %v972_v55 = vmul.f32 %v1638_v48, %v2397_v51  ;;  %v988_v56 = vmul.f32 %v1686_v49, %v2397_v51 }
 0x193   : > { %1590 = vst [vmem:[%s2412_s25 + $0x8] sm:$0xff] %v1518_v50   ;;  %1598 = vst [vmem:[%s2412_s25 + $0x48] sm:$0xff] %v1558_v52  }
 0x194   : > { %v1011_v58 = vadd.f32 %v2399_v57, %v972_v55  ;;  %v1027_v59 = vadd.f32 %v2399_v57, %v988_v56  ;;  %v1639_v60 = vpop.f32.mrb[12].mxu0  ;;  %v1687_v61 = vpop.f32.mrb[12].mxu1  ;;  %v1042_v62 = vmax.f32 %v1010_v53, 0.0  ;;  %v1058_v63 = vmax.f32 %v1026_v54, 0.0 }
 0x195   : > { %v1640_v0 = vpop.f32.mrb[13].mxu0  ;;  %v1688_v1 = vpop.f32.mrb[13].mxu1 }
 0x196   : > { %v1043_v2 = vmax.f32 %v1011_v58, 0.0  ;;  %v1059_v3 = vmax.f32 %v1027_v59, 0.0  ;;  %v1641_v4 = vadd.f32 %v1640_v0, %v1639_v60  ;;  %v1689_v5 = vadd.f32 %v1688_v1, %v1687_v61  ;;  %v1642_v6 = vpop.f32.mrb[14].mxu0  ;;  %v1690_v7 = vpop.f32.mrb[14].mxu1 }
 0x197   : > { %v1643_v8 = vpop.f32.mrb[15].mxu0  ;;  %v1691_v9 = vpop.f32.mrb[15].mxu1 }
 0x198   : > { %v1523_v10 = vpack.c.bf16 %v1043_v2, %v1042_v62  ;;  %v1563_v11 = vpack.c.bf16 %v1059_v3, %v1058_v63  ;;  %v973_v12 = vmul.f32 %v1641_v4, %v2397_v51  ;;  %v989_v13 = vmul.f32 %v1689_v5, %v2397_v51 }
 0x199   : > { %v1644_v14 = vadd.f32 %v1643_v8, %v1642_v6  ;;  %v1692_v15 = vadd.f32 %v1691_v9, %v1690_v7 }
 0x19a   : > { %1591 = vst [vmem:[%s2412_s25 + $0x10] sm:$0xff] %v1523_v10   ;;  %1599 = vst [vmem:[%s2412_s25 + $0x50] sm:$0xff] %v1563_v11   ;;  %v1012_v16 = vadd.f32 %v2399_v57, %v973_v12  ;;  %v1028_v17 = vadd.f32 %v2399_v57, %v989_v13 }
 0x19b   : > { %v974_v18 = vmul.f32 %v1644_v14, %v2397_v51  ;;  %v990_v19 = vmul.f32 %v1692_v15, %v2397_v51 }
 0x19c   : > { %v1645_v20 = vpop.f32.mrb[16].mxu0  ;;  %v1693_v21 = vpop.f32.mrb[16].mxu1  ;;  %v1044_v30 = vmax.f32 %v1012_v16, 0.0  ;;  %v1060_v31 = vmax.f32 %v1028_v17, 0.0 }
 0x19d   : > { %v1013_v22 = vadd.f32 %v2399_v57, %v974_v18  ;;  %v1029_v23 = vadd.f32 %v2399_v57, %v990_v19  ;;  %v1646_v24 = vpop.f32.mrb[17].mxu0  ;;  %v1694_v25 = vpop.f32.mrb[17].mxu1 }
 0x19e   : > { %v1647_v26 = vadd.f32 %v1646_v24, %v1645_v20  ;;  %v1695_v27 = vadd.f32 %v1694_v25, %v1693_v21  ;;  %v1648_v28 = vpop.f32.mrb[18].mxu0  ;;  %v1696_v29 = vpop.f32.mrb[18].mxu1 }
 0x19f   : > { %v1045_v32 = vmax.f32 %v1013_v22, 0.0  ;;  %v1061_v33 = vmax.f32 %v1029_v23, 0.0  ;;  %v1649_v34 = vpop.f32.mrb[19].mxu0  ;;  %v1697_v35 = vpop.f32.mrb[19].mxu1 }
 0x1a0   : > { %v975_v36 = vmul.f32 %v1647_v26, %v2397_v51  ;;  %v991_v37 = vmul.f32 %v1695_v27, %v2397_v51  ;;  %v1650_v38 = vadd.f32 %v1649_v34, %v1648_v28  ;;  %v1698_v39 = vadd.f32 %v1697_v35, %v1696_v29 }
 0x1a1   : > { %v1528_v40 = vpack.c.bf16 %v1045_v32, %v1044_v30  ;;  %v1568_v41 = vpack.c.bf16 %v1061_v33, %v1060_v31 }
 0x1a2   : > { %v1014_v42 = vadd.f32 %v2399_v57, %v975_v36  ;;  %v1030_v43 = vadd.f32 %v2399_v57, %v991_v37  ;;  %v976_v44 = vmul.f32 %v1650_v38, %v2397_v51  ;;  %v992_v45 = vmul.f32 %v1698_v39, %v2397_v51 }
 0x1a3   : > { %1592 = vst [vmem:[%s2412_s25 + $0x18] sm:$0xff] %v1528_v40   ;;  %1600 = vst [vmem:[%s2412_s25 + $0x58] sm:$0xff] %v1568_v41  }
 0x1a4   : > { %v1015_v46 = vadd.f32 %v2399_v57, %v976_v44  ;;  %v1031_v47 = vadd.f32 %v2399_v57, %v992_v45  ;;  %v1651_v48 = vpop.f32.mrb[20].mxu0  ;;  %v1699_v49 = vpop.f32.mrb[20].mxu1  ;;  %v1046_v50 = vmax.f32 %v1014_v42, 0.0  ;;  %v1062_v52 = vmax.f32 %v1030_v43, 0.0 }
 0x1a5   : > { %v1652_v53 = vpop.f32.mrb[21].mxu0  ;;  %v1700_v54 = vpop.f32.mrb[21].mxu1 }
 0x1a6   : > { %v1047_v55 = vmax.f32 %v1015_v46, 0.0  ;;  %v1063_v56 = vmax.f32 %v1031_v47, 0.0  ;;  %v1653_v58 = vadd.f32 %v1652_v53, %v1651_v48  ;;  %v1701_v59 = vadd.f32 %v1700_v54, %v1699_v49  ;;  %v1654_v60 = vpop.f32.mrb[22].mxu0  ;;  %v1702_v61 = vpop.f32.mrb[22].mxu1 }
 0x1a7   : > { %v1655_v62 = vpop.f32.mrb[23].mxu0  ;;  %v1703_v63 = vpop.f32.mrb[23].mxu1 }
 0x1a8   : > { %v1533_v0 = vpack.c.bf16 %v1047_v55, %v1046_v50  ;;  %v1573_v1 = vpack.c.bf16 %v1063_v56, %v1062_v52  ;;  %v977_v2 = vmul.f32 %v1653_v58, %v2397_v51  ;;  %v993_v3 = vmul.f32 %v1701_v59, %v2397_v51 }
 0x1a9   : > { %v1656_v4 = vadd.f32 %v1655_v62, %v1654_v60  ;;  %v1704_v5 = vadd.f32 %v1703_v63, %v1702_v61 }
 0x1aa   : > { %1593 = vst [vmem:[%s2412_s25 + $0x20] sm:$0xff] %v1533_v0   ;;  %1601 = vst [vmem:[%s2412_s25 + $0x60] sm:$0xff] %v1573_v1   ;;  %v1016_v6 = vadd.f32 %v2399_v57, %v977_v2  ;;  %v1032_v7 = vadd.f32 %v2399_v57, %v993_v3 }
 0x1ab   : > { %v978_v8 = vmul.f32 %v1656_v4, %v2397_v51  ;;  %v994_v9 = vmul.f32 %v1704_v5, %v2397_v51 }
 0x1ac   : > { %v1657_v10 = vpop.f32.mrb[24].mxu0  ;;  %v1705_v11 = vpop.f32.mrb[24].mxu1  ;;  %v1048_v20 = vmax.f32 %v1016_v6, 0.0  ;;  %v1064_v21 = vmax.f32 %v1032_v7, 0.0 }
 0x1ad   : > { %v1017_v12 = vadd.f32 %v2399_v57, %v978_v8  ;;  %v1033_v13 = vadd.f32 %v2399_v57, %v994_v9  ;;  %v1658_v14 = vpop.f32.mrb[25].mxu0  ;;  %v1706_v15 = vpop.f32.mrb[25].mxu1 }
 0x1ae   : > { %v1659_v16 = vadd.f32 %v1658_v14, %v1657_v10  ;;  %v1707_v17 = vadd.f32 %v1706_v15, %v1705_v11  ;;  %v1660_v18 = vpop.f32.mrb[26].mxu0  ;;  %v1708_v19 = vpop.f32.mrb[26].mxu1 }
 0x1af   : > { %v1049_v22 = vmax.f32 %v1017_v12, 0.0  ;;  %v1065_v23 = vmax.f32 %v1033_v13, 0.0  ;;  %v1661_v24 = vpop.f32.mrb[27].mxu0  ;;  %v1709_v25 = vpop.f32.mrb[27].mxu1 }
 0x1b0   : > { %v979_v26 = vmul.f32 %v1659_v16, %v2397_v51  ;;  %v995_v27 = vmul.f32 %v1707_v17, %v2397_v51  ;;  %v1662_v28 = vadd.f32 %v1661_v24, %v1660_v18  ;;  %v1710_v29 = vadd.f32 %v1709_v25, %v1708_v19 }
 0x1b1   : > { %v1538_v30 = vpack.c.bf16 %v1049_v22, %v1048_v20  ;;  %v1578_v31 = vpack.c.bf16 %v1065_v23, %v1064_v21 }
 0x1b2   : > { %v1018_v32 = vadd.f32 %v2399_v57, %v979_v26  ;;  %v1034_v33 = vadd.f32 %v2399_v57, %v995_v27  ;;  %v980_v34 = vmul.f32 %v1662_v28, %v2397_v51  ;;  %v996_v35 = vmul.f32 %v1710_v29, %v2397_v51 }
 0x1b3   : > { %1594 = vst [vmem:[%s2412_s25 + $0x28] sm:$0xff] %v1538_v30   ;;  %1602 = vst [vmem:[%s2412_s25 + $0x68] sm:$0xff] %v1578_v31  }
 0x1b4   : > { %v1019_v36 = vadd.f32 %v2399_v57, %v980_v34  ;;  %v1035_v37 = vadd.f32 %v2399_v57, %v996_v35  ;;  %v1663_v38 = vpop.f32.mrb[28].mxu0  ;;  %v1711_v39 = vpop.f32.mrb[28].mxu1  ;;  %v1050_v40 = vmax.f32 %v1018_v32, 0.0  ;;  %v1066_v41 = vmax.f32 %v1034_v33, 0.0 }
 0x1b5   : > { %v1664_v42 = vpop.f32.mrb[29].mxu0  ;;  %v1712_v43 = vpop.f32.mrb[29].mxu1 }
 0x1b6   : > { %v1051_v44 = vmax.f32 %v1019_v36, 0.0  ;;  %v1067_v45 = vmax.f32 %v1035_v37, 0.0  ;;  %v1665_v46 = vadd.f32 %v1664_v42, %v1663_v38  ;;  %v1713_v47 = vadd.f32 %v1712_v43, %v1711_v39  ;;  %v1666_v48 = vpop.f32.mrb[30].mxu0  ;;  %v1714_v49 = vpop.f32.mrb[30].mxu1 }
 0x1b7   : > { %v1667_v50 = vpop.f32.mrb[31].mxu0  ;;  %v1715_v52 = vpop.f32.mrb[31].mxu1 }
 0x1b8   : > { %v1543_v53 = vpack.c.bf16 %v1051_v44, %v1050_v40  ;;  %v1583_v54 = vpack.c.bf16 %v1067_v45, %v1066_v41  ;;  %v981_v55 = vmul.f32 %v1665_v46, %v2397_v51  ;;  %v997_v56 = vmul.f32 %v1713_v47, %v2397_v51 }
 0x1b9   : > { %v1668_v58 = vadd.f32 %v1667_v50, %v1666_v48  ;;  %v1716_v59 = vadd.f32 %v1715_v52, %v1714_v49 }
 0x1ba   : > { %1595 = vst [vmem:[%s2412_s25 + $0x30] sm:$0xff] %v1543_v53   ;;  %1603 = vst [vmem:[%s2412_s25 + $0x70] sm:$0xff] %v1583_v54   ;;  %v1020_v60 = vadd.f32 %v2399_v57, %v981_v55  ;;  %v1036_v61 = vadd.f32 %v2399_v57, %v997_v56 }
 0x1bb   : > { %v982_v62 = vmul.f32 %v1668_v58, %v2397_v51  ;;  %v998_v63 = vmul.f32 %v1716_v59, %v2397_v51 }
 0x1bc   : > { %v1052_v2 = vmax.f32 %v1020_v60, 0.0  ;;  %v1068_v3 = vmax.f32 %v1036_v61, 0.0 }
 0x1bd   : > { %v1021_v0 = vadd.f32 %v2399_v57, %v982_v62  ;;  %v1037_v1 = vadd.f32 %v2399_v57, %v998_v63 }
 0x1bf   : > { %v1053_v4 = vmax.f32 %v1021_v0, 0.0  ;;  %v1069_v5 = vmax.f32 %v1037_v1, 0.0 }
 0x1c1   : > { %v1548_v51 = vpack.c.bf16 %v1053_v4, %v1052_v2  ;;  %v1588_v6 = vpack.c.bf16 %v1069_v5, %v1068_v3 }
 0x1c3   : > { %1596 = vst [vmem:[%s2412_s25 + $0x38] sm:$0xff] %v1548_v51   ;;  %1604 = vst [vmem:[%s2412_s25 + $0x78] sm:$0xff] %v1588_v6  }
 0x1c4   : > { %2023 = shalt.err (!%p2020_p13)
}
 0x1c5   : > { %s2024_s29 = scalar_lea.hbm %s2487_s6, 2048  ;;  %s2028_s8 = scalar_lea.hbm %s2543_s4, 702464 }
 0x1c6   : > { %p2025_p4 = scmp.ne.s32.totalorder %s2487_s6, %s2024_s29  ;;  %p2029_p11 = scmp.lt.u32.totalorder %s2487_s6, %s2543_s4 }
 0x1c7   : > { %p2030_p1 = scmp.lt.u32.totalorder %s2028_s8, %s2024_s29  ;;  %p2032_p12 = scmp.lt.u32.totalorder %s2024_s29, %s2487_s6 }
 0x1c8   : > { %p2026_p2 = pnand %p2025_p4, %p2289_p0 }
 0x1c9   : > { %p2031_p10 = por %p2030_p1, %p2029_p11 }
 0x1ca   : > { %p2027_p8 = pneg %p2026_p2 }
 0x1cb   : > { %p2033_p6 = por %p2032_p12, %p2031_p10 }
 0x1cd   : > { %p2034_p3 = pnand %p2033_p6, %p2027_p8 }
 0x1cf   : > { %2037 = shalt.err (!%p2034_p3)
}
 0x1d0   : > { %s2111_s25 = smov 64   ;;  %s2112_s27 = smov 4  }
 0x1d1   : > { %1747 = dma.vmem_to_hbm [thread:$0]  (%p2289_p0), %s2489_s24, 2048, %s2487_s6, %s1231_s18, %s2111_s25, %s2111_s25, %s2112_s27  }
 0x1d2 PF: > { %s2563_s22 = sld [smem:[#allocation16_spill]]  ;;  %p1774_p5 = scmp.ge.s32.totalorder %s2100_s20, 2 }
 0x1d3   : > { %s1260_s28 = sand.u32 1, %s2080_s15  }
 0x1d4   : > { %s1261_s7 = scalar_lea.sflag [#allocation5], %s1260_s28 }
 0x1d8   : > { %p2564_p7 = scmp.ne.s32.totalorder %s2563_s22, 0 }
 0x1da   : > { %p1764_p9 = pnand %p1774_p5, %p2564_p7 }
 0x1dc   : > { %2075 = dma.done.wait (!%p1764_p9), %s1261_s7, 2048  }
 0x1dd   : > { %2077 = vsyncadd (!%p1764_p9), %s1261_s7, 4294965248  ;;  %s22_s20 = sadd.s32 1, %s2100_s20   ;;  %s2565_s15 = smov %s2084_s16 }
 0x1de   : > { %p19_p13 = scmp.ge.s32.totalorder %s22_s20, 345   ;;  %s2566_s16 = smov %s2088_s17 }
 0x1df   : > { %s2567_s17 = smov %s2301_s11  ;;  %s2568_s18 = smov %s2096_s19 }
 0x1e0   : > { %s2569_s19 = smov %s2571_s26  ;;  %21 = sbr.rel (!%p19_p13) target bundleno = 8 (0x8), region = 104 }
 0x1e7   :  { %1266 = vsyncpa [#allocation4], 1 }
 0x1e8   :  { %1268 = vsyncpa [#allocation4 + $0x1], 1 }
 0x1e9   :  { %1269 = vsyncpa [#allocation7], 1 }
 0x1ea   :  { %1270 = vsyncpa [#allocation10], 1 }
 0x1eb   :  { %1271 = vsyncpa [#allocation5], 1 }
 0x1ec   :  { %1273 = vsyncpa [#allocation5 + $0x1], 1 }

</bundles_post_ra>
